<compile_context>
chip_gen: v6e
topology: v6e:2x2x1
jax: 0.10.0
libtpu: 0.0.40
codegen_flags: <defaults>
</compile_context>

<pallas_src>
import math

import jax
import jax.numpy as jnp
from jax.experimental import pallas as pl
from jax.experimental.pallas import tpu as pltpu


_SQRT_HALF = 1.0 / math.sqrt(2.0)


def _gelu_exact(x):
    # PyTorch nn.GELU() default = exact erf-based GELU (kept for parity; at real H
    # the VPU erf polynomial is hidden under the two MXU matmuls).
    return 0.5 * x * (1.0 + jax.lax.erf(x * _SQRT_HALF))


def _round_up(a, b):
    return (a + b - 1) // b * b


# ----------------------------- kernels --------------------------------------

def _ffn_kernel_f32_out(x_ref, w1_ref, b1_ref, w2_ref, b2_ref, o_ref):
    """f32 output: accumulate directly into o_ref (resident across the k axis)."""
    k = pl.program_id(1)

    @pl.when(k == 0)
    def _init():
        o_ref[...] = jnp.zeros_like(o_ref)

    # h_chunk = GELU(x @ W1[:, chunk] + b1[chunk])  (f32 accumulation, f32 GELU)
    h = jnp.dot(x_ref[...], w1_ref[...], preferred_element_type=jnp.float32)
    h = _gelu_exact(h + b1_ref[...])

    # Accumulate h_chunk @ W2[chunk, :] straight into the resident output block.
    o_ref[...] += jnp.dot(h.astype(jnp.bfloat16), w2_ref[...],
                          preferred_element_type=jnp.float32)

    @pl.when(k == pl.num_programs(1) - 1)
    def _finalize():
        o_ref[...] += b2_ref[...]          # b2 added once, in the epilogue only


def _ffn_kernel_acc(x_ref, w1_ref, b1_ref, w2_ref, b2_ref, o_ref, acc_ref):
    """Narrow output dtype: f32 scratch accumulator, single cast in the epilogue."""
    k = pl.program_id(1)

    @pl.when(k == 0)
    def _init():
        acc_ref[...] = jnp.zeros_like(acc_ref)

    h = jnp.dot(x_ref[...], w1_ref[...], preferred_element_type=jnp.float32)
    h = _gelu_exact(h + b1_ref[...])
    acc_ref[...] += jnp.dot(h.astype(jnp.bfloat16), w2_ref[...],
                            preferred_element_type=jnp.float32)

    @pl.when(k == pl.num_programs(1) - 1)
    def _finalize():
        o_ref[...] = (acc_ref[...] + b2_ref[...]).astype(o_ref.dtype)


# --------------------------- parameter prep ---------------------------------

def prepare_ffn_weights(w1, b1, w2, b2):
    """Pre-cast / pre-pad the FFN parameters ONCE, outside the hot path.

    Weights -> bf16 (MXU operands), biases -> f32, H and I zero-padded to the next
    multiple of 128 (a no-op for real transformer widths).  Passing the returned
    arrays to feed_forward avoids per-call weight re-cast/re-pad HBM traffic.
    """
    H, I = int(w1.shape[0]), int(w1.shape[1])
    Hp, Ip = _round_up(H, 128), _round_up(I, 128)

    def _pad_cast(a, rows, cols, dt):
        a = jnp.asarray(a, dt)
        if a.shape == (rows, cols):
            return a                      # aligned: skip the zeros().at[].set() path
        return jnp.zeros((rows, cols), dt).at[:a.shape[0], :a.shape[1]].set(a)

    w1p = _pad_cast(w1, Hp, Ip, jnp.bfloat16)
    b1p = _pad_cast(jnp.reshape(b1, (1, -1)), 1, Ip, jnp.float32)
    w2p = _pad_cast(w2, Ip, Hp, jnp.bfloat16)
    b2p = _pad_cast(jnp.reshape(b2, (1, -1)), 1, Hp, jnp.float32)
    return w1p, b1p, w2p, b2p


def _is_prepared(w1, b1, w2, b2):
    Hp, Ip = w1.shape
    return (w1.dtype == jnp.bfloat16 and w2.dtype == jnp.bfloat16
            and Hp % 128 == 0 and Ip % 128 == 0
            and tuple(w2.shape) == (Ip, Hp)
            and tuple(b1.shape) == (1, Ip) and b1.dtype == jnp.float32
            and tuple(b2.shape) == (1, Hp) and b2.dtype == jnp.float32)


# ------------------------------ wrapper --------------------------------------

def feed_forward(x, w1, b1, w2, b2, *, tm=None, ti=None, interpret=False):
    """GELU(x @ W1 + b1) @ W2 + b2.   x: (M, H) -> (M, H).

    Accepts raw f32 parameters (w1:(H,I), b1:(I,), w2:(I,H), b2:(H,)) or the
    pre-prepared form from prepare_ffn_weights (preferred in a hot loop).
    """
    M, H = x.shape
    out_dtype = x.dtype

    if not _is_prepared(w1, b1, w2, b2):
        w1, b1, w2, b2 = prepare_ffn_weights(w1, b1, w2, b2)
    Hp, Ip = int(w1.shape[0]), int(w1.shape[1])

    # ---- per-chip tile / VMEM budget selection ------------------------------
    try:
        vmem_cap = int(pltpu.get_tpu_info().vmem_capacity_bytes)
    except Exception:
        vmem_cap = 64 * 1024 * 1024        # most conservative (v7x per-TC VMEM)
    usable = int(vmem_cap * 0.80)          # headroom for compiler-internal scratch

    out_bytes = jnp.dtype(out_dtype).itemsize
    use_acc = jnp.dtype(out_dtype) != jnp.dtype(jnp.float32)

    def _vmem_model(tm_, ti_):
        w = 2 * Hp * ti_ * 2 * 2            # W1 + W2 chunks, bf16, double-buffered
        xb = 2 * tm_ * Hp * 2               # x tile, bf16, double-buffered
        ob = 2 * tm_ * Hp * out_bytes       # output tile, double-buffered
        acc = tm_ * Hp * 4 if use_acc else 0
        hbuf = tm_ * ti_ * 6                # internal (tm, ti) f32 h + bf16 copy
        misc = 1 << 20                      # biases, semaphores, slack
        return w + xb + ob + acc + hbuf + misc

    # ti: 512 on 128-MiB parts (v5e/v6e), 256 on 64-MiB v7x.  Must be a multiple
    # of 128 dividing Ip.  If even tm=256 would not fit, trade ti down further:
    # only tm reduces weight re-streaming, ti only changes per-step amortization.
    if ti is None:
        ti = 512 if vmem_cap > 80 * 1024 * 1024 else 256
    else:
        ti = _round_up(int(ti), 128)
    ti = min(ti, Ip)
    while Ip % ti:
        ti -= 128
    while ti > 128 and _vmem_model(256, ti) > usable:
        ti -= 128
        while Ip % ti:
            ti -= 128

    # tm: largest MXU-aligned (256) token tile that fits VMEM -> weights are
    # re-streamed once per token tile, so bigger tm directly cuts weight DMA.
    if tm is None:
        tm = 1024
        while tm > 256 and _vmem_model(tm, ti) > usable:
            tm -= 256
        if M <= tm:
            if M >= 512:
                tm = _round_up(-(-M // 2), 256)   # >=2 parallel tiles (megacore)
            elif M >= 256:
                tm = _round_up(-(-M // 2), 128)   # 2 smaller tiles for both TCs
            else:
                tm = _round_up(M, 16)             # decode-size M: no over-padding
    else:
        tm = _round_up(int(tm), 128) if tm >= 128 else _round_up(int(tm), 16)
    # TODO(synk): for very large Hp (>=16K) on 64-MiB v7x even tm=256/ti=128 may
    # not fit; split into two pallas_calls or tile Hp in that regime.

    Mp = _round_up(M, tm)

    # x / out padding only when actually needed (activations are cheap vs weights).
    if x.dtype == jnp.bfloat16 and (M, H) == (Mp, Hp):
        xp = x
    else:
        xp = jnp.zeros((Mp, Hp), jnp.bfloat16).at[:M, :H].set(
            x.astype(jnp.bfloat16))

    grid = (Mp // tm, Ip // ti)
    n_m_tiles = grid[0]

    cost = pl.CostEstimate(
        flops=4 * Mp * Hp * Ip,                       # two matmuls, 2*M*H*I each
        transcendentals=Mp * Ip,                      # one erf per intermediate elem
        bytes_accessed=(n_m_tiles * 2 * Hp * Ip * 2   # weights re-streamed per tile
                        + Mp * Hp * 2                 # x (bf16)
                        + Mp * Hp * out_bytes),       # output
    )

    vmem_limit = int(min(vmem_cap,
                         max(_vmem_model(tm, ti) + (4 << 20), 16 * 1024 * 1024)))

    kernel = _ffn_kernel_acc if use_acc else _ffn_kernel_f32_out
    scratch = [pltpu.VMEM((tm, Hp), jnp.float32)] if use_acc else []

    out = pl.pallas_call(
        kernel,
        out_shape=jax.ShapeDtypeStruct((Mp, Hp), out_dtype),
        grid_spec=pltpu.PrefetchScalarGridSpec(
            num_scalar_prefetch=0,
            grid=grid,
            in_specs=[
                pl.BlockSpec((tm, Hp), lambda i, k: (i, 0)),   # x token tile
                pl.BlockSpec((Hp, ti), lambda i, k: (0, k)),   # W1 I-chunk
                pl.BlockSpec((1, ti), lambda i, k: (0, k)),    # b1 chunk
                pl.BlockSpec((ti, Hp), lambda i, k: (k, 0)),   # W2 I-chunk
                pl.BlockSpec((1, Hp), lambda i, k: (0, 0)),    # b2 (epilogue only)
            ],
            out_specs=pl.BlockSpec((tm, Hp), lambda i, k: (i, 0)),
            scratch_shapes=scratch,
        ),
        compiler_params=pltpu.CompilerParams(
            dimension_semantics=("parallel", "arbitrary"),
            vmem_limit_bytes=vmem_limit,
        ),
        cost_estimate=cost,
        interpret=interpret,
    )(xp, w1, b1, w2, b2)

    if (Mp, Hp) == (M, H):
        return out
    return out[:M, :H]


def feed_forward_ref(x, w1, b1, w2, b2):
    h = x @ w1 + b1
    h = _gelu_exact(h)
    return h @ w2 + b2


if __name__ == "__main__":
    # Small shapes consistent with the module: hidden=32, intermediate=4*32=128,
    # batch=2, seq=8 -> 16 token rows.
    batch, seq, hidden, inter = 2, 8, 32, 128

    key = jax.random.PRNGKey(0)
    kx, kw1, kb1, kw2, kb2 = jax.random.split(key, 5)

    x = jax.random.normal(kx, (batch, seq, hidden), dtype=jnp.float32)

    # Deterministic init mimicking nn.Linear's uniform(-1/sqrt(fan_in), ...).
    lim1 = 1.0 / math.sqrt(hidden)
    lim2 = 1.0 / math.sqrt(inter)
    # Stored as (in, out): kernel does x @ W (PyTorch stores (out, in), does x @ W.T).
    w1 = jax.random.uniform(kw1, (hidden, inter), minval=-lim1, maxval=lim1,
                            dtype=jnp.float32)
    b1 = jax.random.uniform(kb1, (inter,), minval=-lim1, maxval=lim1,
                            dtype=jnp.float32)
    w2 = jax.random.uniform(kw2, (inter, hidden), minval=-lim2, maxval=lim2,
                            dtype=jnp.float32)
    b2 = jax.random.uniform(kb2, (hidden,), minval=-lim2, maxval=lim2,
                            dtype=jnp.float32)

    # Prepare (cast/pad) the weights ONCE outside the hot path, as a real caller
    # would for repeated generation steps.
    w1p, b1p, w2p, b2p = prepare_ffn_weights(w1, b1, w2, b2)

    x2d = x.reshape(batch * seq, hidden)
    out = feed_forward(x2d, w1p, b1p, w2p, b2p)
    out = jax.block_until_ready(out)
    out = out.reshape(batch, seq, hidden)

    ref = feed_forward_ref(x2d, w1, b1, w2, b2).reshape(batch, seq, hidden)
    assert out.shape == (batch, seq, hidden)
    # bf16 MXU operands (f32 accumulation) => tolerance relaxed vs the pure-f32 ref.
    assert jnp.allclose(out, ref, atol=2e-2, rtol=2e-2), "mismatch vs reference"

    print("KERNEL_OK")
</pallas_src>

<mosaic_0001>
module attributes {stable_mosaic.version = 11 : i64} {
  func.func @_ffn_kernel_f32_out(%arg0: i32, %arg1: i32, %arg2: memref<16x128xbf16, #tpu.memory_space<vmem>>, %arg3: memref<128x128xbf16, #tpu.memory_space<vmem>>, %arg4: memref<1x128xf32, #tpu.memory_space<vmem>>, %arg5: memref<128x128xbf16, #tpu.memory_space<vmem>>, %arg6: memref<1x128xf32, #tpu.memory_space<vmem>>, %arg7: memref<16x128xf32, #tpu.memory_space<vmem>>) attributes {dimension_semantics = [#tpu.dimension_semantics<parallel>, #tpu.dimension_semantics<arbitrary>], iteration_bounds = array<i64: 1, 1>, scalar_prefetch = 0 : i64, scratch_operands = 0 : i64, tpu.core_type = #tpu.core_type<tc>, window_params = [{transform_indices = @transform_0, window_bounds = array<i64: 16, 128>}, {transform_indices = @transform_1, window_bounds = array<i64: 128, 128>}, {transform_indices = @transform_2, window_bounds = array<i64: 1, 128>}, {transform_indices = @transform_3, window_bounds = array<i64: 128, 128>}, {pipeline_mode = #tpu.pipeline_mode<synchronous>, transform_indices = @transform_4, window_bounds = array<i64: 1, 128>}, {transform_indices = @transform_5, window_bounds = array<i64: 16, 128>}]} {
    %c0_i32 = arith.constant 0 : i32
    %0 = arith.cmpi eq, %arg1, %c0_i32 : i32
    %1 = arith.extui %0 : i1 to i32
    %c0_i32_0 = arith.constant 0 : i32
    %2 = arith.cmpi ne, %1, %c0_i32_0 : i32
    scf.if %2 {
      %cst_18 = arith.constant 0.000000e+00 : f32
      %26 = vector.broadcast %cst_18 : f32 to vector<16x128xf32>
      %c0_19 = arith.constant 0 : index
      %c0_20 = arith.constant 0 : index
      %27 = vector.load %arg7[%c0_19, %c0_20] : memref<16x128xf32, #tpu.memory_space<vmem>>, vector<16x128xf32>
      tpu.vector_store %arg7[%c0_19, %c0_20], %26 {strides = array<i32>} : memref<16x128xf32, #tpu.memory_space<vmem>>, vector<16x128xf32>,
    } else {
    }
    %c0 = arith.constant 0 : index
    %c0_1 = arith.constant 0 : index
    %3 = vector.load %arg2[%c0, %c0_1] : memref<16x128xbf16, #tpu.memory_space<vmem>>, vector<16x128xbf16>
    %c0_2 = arith.constant 0 : index
    %c0_3 = arith.constant 0 : index
    %4 = vector.load %arg3[%c0_2, %c0_3] : memref<128x128xbf16, #tpu.memory_space<vmem>>, vector<128x128xbf16>
    %cst = arith.constant dense<0.000000e+00> : vector<16x128xf32>
    %5 = tpu.matmul %3, %4, %cst {dimension_numbers = #tpu.dot_dimension_numbers<[1], [0], [0], [1], [0, 0, 1, 1], [], []>} : vector<16x128xbf16>, vector<128x128xbf16>, vector<16x128xf32> -> vector<16x128xf32>
    %c0_4 = arith.constant 0 : index
    %c0_5 = arith.constant 0 : index
    %6 = vector.load %arg4[%c0_4, %c0_5] : memref<1x128xf32, #tpu.memory_space<vmem>>, vector<1x128xf32>
    %7 = vector.broadcast %6 : vector<1x128xf32> to vector<16x128xf32>
    %8 = arith.addf %5, %7 : vector<16x128xf32>
    %cst_6 = arith.constant 5.000000e-01 : f32
    %9 = vector.broadcast %cst_6 : f32 to vector<16x128xf32>
    %10 = arith.mulf %9, %8 : vector<16x128xf32>
    %cst_7 = arith.constant 0.707106769 : f32
    %11 = vector.broadcast %cst_7 : f32 to vector<16x128xf32>
    %12 = arith.mulf %8, %11 : vector<16x128xf32>
    %13 = math.erf %12 : vector<16x128xf32>
    %cst_8 = arith.constant 1.000000e+00 : f32
    %14 = vector.broadcast %cst_8 : f32 to vector<16x128xf32>
    %15 = arith.addf %14, %13 : vector<16x128xf32>
    %16 = arith.mulf %10, %15 : vector<16x128xf32>
    %c0_9 = arith.constant 0 : index
    %c0_10 = arith.constant 0 : index
    %17 = vector.load %arg7[%c0_9, %c0_10] : memref<16x128xf32, #tpu.memory_space<vmem>>, vector<16x128xf32>
    %18 = arith.truncf %16 : vector<16x128xf32> to vector<16x128xbf16>
    %c0_11 = arith.constant 0 : index
    %c0_12 = arith.constant 0 : index
    %19 = vector.load %arg5[%c0_11, %c0_12] : memref<128x128xbf16, #tpu.memory_space<vmem>>, vector<128x128xbf16>
    %cst_13 = arith.constant dense<0.000000e+00> : vector<16x128xf32>
    %20 = tpu.matmul %18, %19, %cst_13 {dimension_numbers = #tpu.dot_dimension_numbers<[1], [0], [0], [1], [0, 0, 1, 1], [], []>} : vector<16x128xbf16>, vector<128x128xbf16>, vector<16x128xf32> -> vector<16x128xf32>
    %21 = arith.addf %17, %20 : vector<16x128xf32>
    %c0_14 = arith.constant 0 : index
    %c0_15 = arith.constant 0 : index
    %22 = vector.load %arg7[%c0_14, %c0_15] : memref<16x128xf32, #tpu.memory_space<vmem>>, vector<16x128xf32>
    tpu.vector_store %arg7[%c0_14, %c0_15], %21 {strides = array<i32>} : memref<16x128xf32, #tpu.memory_space<vmem>>, vector<16x128xf32>,
    %c0_i32_16 = arith.constant 0 : i32
    %23 = arith.cmpi eq, %arg1, %c0_i32_16 : i32
    %24 = arith.extui %23 : i1 to i32
    %c0_i32_17 = arith.constant 0 : i32
    %25 = arith.cmpi ne, %24, %c0_i32_17 : i32
    scf.if %25 {
      %c0_18 = arith.constant 0 : index
      %c0_19 = arith.constant 0 : index
      %26 = vector.load %arg7[%c0_18, %c0_19] : memref<16x128xf32, #tpu.memory_space<vmem>>, vector<16x128xf32>
      %c0_20 = arith.constant 0 : index
      %c0_21 = arith.constant 0 : index
      %27 = vector.load %arg6[%c0_20, %c0_21] : memref<1x128xf32, #tpu.memory_space<vmem>>, vector<1x128xf32>
      %28 = vector.broadcast %27 : vector<1x128xf32> to vector<16x128xf32>
      %29 = arith.addf %26, %28 : vector<16x128xf32>
      %c0_22 = arith.constant 0 : index
      %c0_23 = arith.constant 0 : index
      %30 = vector.load %arg7[%c0_22, %c0_23] : memref<16x128xf32, #tpu.memory_space<vmem>>, vector<16x128xf32>
      tpu.vector_store %arg7[%c0_22, %c0_23], %29 {strides = array<i32>} : memref<16x128xf32, #tpu.memory_space<vmem>>, vector<16x128xf32>,
    } else {
    }
    return
  }
  func.func @transform_0(%arg0: i32, %arg1: i32) -> (i32, i32) {
    %c0_i32 = arith.constant 0 : i32
    %c0_i32_0 = arith.constant 0 : i32
    return %arg0, %c0_i32 : i32, i32
  }
  func.func @transform_1(%arg0: i32, %arg1: i32) -> (i32, i32) {
    %c0_i32 = arith.constant 0 : i32
    %c0_i32_0 = arith.constant 0 : i32
    return %c0_i32, %arg1 : i32, i32
  }
  func.func @transform_2(%arg0: i32, %arg1: i32) -> (i32, i32) {
    %c0_i32 = arith.constant 0 : i32
    %c0_i32_0 = arith.constant 0 : i32
    return %c0_i32, %arg1 : i32, i32
  }
  func.func @transform_3(%arg0: i32, %arg1: i32) -> (i32, i32) {
    %c0_i32 = arith.constant 0 : i32
    %c0_i32_0 = arith.constant 0 : i32
    return %arg1, %c0_i32 : i32, i32
  }
  func.func @transform_4(%arg0: i32, %arg1: i32) -> (i32, i32) {
    %c0_i32 = arith.constant 0 : i32
    %c0_i32_0 = arith.constant 0 : i32
    %c0_i32_1 = arith.constant 0 : i32
    return %c0_i32, %c0_i32_0 : i32, i32
  }
  func.func @transform_5(%arg0: i32, %arg1: i32) -> (i32, i32) {
    %c0_i32 = arith.constant 0 : i32
    %c0_i32_0 = arith.constant 0 : i32
    return %arg0, %c0_i32 : i32, i32
  }
}

</mosaic_0001>

<bundles_post_ra>
// kernel: tpu_custom_call.1
= control target key start
LH: loop header
LB: loop body
LE: loop exit
PB: predicated region body
PF: predicated region fallthrough
CT: control target
= control target key end

     0   :  { %10 = vsyncpa [#allocation3], 0  ;;  %s597_s0 = inlined_call_operand.hbm [shape: bf16[16,128], index: 0, kind: input, shape index: {}]   ;;  %s598_s1 = inlined_call_operand.hbm [shape: bf16[128,128], index: 1, kind: input, shape index: {}]   ;;  %s599_s2 = inlined_call_operand.vmem [shape: f32[1,128], index: 2, kind: input, shape index: {}]   ;;  %s600_s3 = inlined_call_operand.hbm [shape: bf16[128,128], index: 3, kind: input, shape index: {}]   ;;  %s601_s4 = inlined_call_operand.vmem [shape: f32[1,128], index: 4, kind: input, shape index: {}]   ;;  %s602_s5 = inlined_call_operand.hbm [shape: f32[16,128], index: 5, kind: output, shape index: {}]  }
   0x1   :  { %11 = vsyncpa [#allocation6], 0 }
   0x2   :  { %12 = vsyncpa [#allocation4], 0  ;;  %s539_s18 = smov [#allocation5]   ;;  %s540_s20 = smov [#allocation2]  }
   0x3   :  { %s30_s19 = sshll.u32 %s539_s18, 4  ;;  %s18_s21 = sshll.u32 %s540_s20, 4  ;;  %s31_s19 = int_to_ptr.vmem [resolvable:$true] %s30_s19  ;;  %s19_s21 = int_to_ptr.vmem [resolvable:$true] %s18_s21 }
   0x4   :  { %s461_s22 = scalar_lea.vmem %s31_s19, 1024  ;;  %p466_p1 = scmp.lt.s32.totalorder %s31_s19, %s31_s19 }
   0x5   :  { %p462_p0 = scmp.ne.s32.totalorder %s31_s19, %s461_s22  ;;  %p467_p2 = scmp.lt.s32.totalorder %s461_s22, %s461_s22 }
   0x7   :  { %p468_p3 = por %p467_p2, %p466_p1 }
   0x9   :  { %p469_p4 = pnand %p468_p3, %p462_p0 }
   0xb   :  { %472 = shalt.err (!%p469_p4)
}
   0xc   :  { %s541_s23 = smov 64   ;;  %s542_s24 = smov 4  }
   0xd   :  { %36 = dma.hbm_to_vmem [thread:$0]  %s598_s1, 1024, %s31_s19, [#allocation6], %s541_s23, %s541_s23, %s542_s24  }
   0xe   :  { %s481_s27 = scalar_lea.vmem %s19_s21, 128  ;;  %p486_p6 = scmp.lt.s32.totalorder %s19_s21, %s19_s21 }
   0xf   :  { %p482_p5 = scmp.ne.s32.totalorder %s19_s21, %s481_s27  ;;  %p487_p7 = scmp.lt.s32.totalorder %s481_s27, %s481_s27 }
  0x11   :  { %p488_p8 = por %p487_p7, %p486_p6 }
  0x13   :  { %p489_p9 = pnand %p488_p8, %p482_p5 }
  0x15   :  { %492 = shalt.err (!%p489_p9)
}
  0x16   :  { %24 = dma.hbm_to_vmem [thread:$0]  %s597_s0, 128, %s19_s21, [#allocation3], %s541_s23, %s541_s23, %s542_s24  }
  0x17   :  { %s543_s30 = smov [#allocation7]  }
  0x18   :  { %s44_s6 = sshll.u32 %s543_s30, 4  ;;  %s45_s6 = int_to_ptr.vmem [resolvable:$true] %s44_s6 }
  0x19   :  { %s501_s7 = scalar_lea.vmem %s45_s6, 1024  ;;  %p506_p11 = scmp.lt.s32.totalorder %s45_s6, %s45_s6 }
  0x1a   :  { %p502_p10 = scmp.ne.s32.totalorder %s45_s6, %s501_s7  ;;  %p507_p12 = scmp.lt.s32.totalorder %s501_s7, %s501_s7 }
  0x1c   :  { %p508_p13 = por %p507_p12, %p506_p11 }
  0x1e   :  { %p509_p0 = pnand %p508_p13, %p502_p10 }
  0x20   :  { %512 = shalt.err (!%p509_p0)
}
  0x21   :  { %50 = dma.hbm_to_vmem [thread:$0]  %s600_s3, 1024, %s45_s6, [#allocation6], %s541_s23, %s541_s23, %s542_s24  }
  0x22   :  { %533 = dma.done.wait [#allocation3], 128  }
  0x23   :  { %534 = vsyncadd [#allocation3], 4294967168 }
  0x24   :  { %535 = dma.done.wait [#allocation6], 2048  }
  0x25   :  { %536 = vsyncadd [#allocation6], 4294965248  ;;  %v544_v0 = vmov 0.0   ;;  %vm545_vm0 = vmmov 0   ;;  %v432_v1 = vld [vmem:[#allocation5 + $0x38] sm:$0xff]   ;;  %v433_v2 = vld [vmem:[#allocation5 + $0x30] sm:$0xff]  }
  0x26   :  { %382 = vmatprep.subr.bf16.mxu0 %v544_v0  ;;  %398 = vmatprep.mubr.msk.bf16.mxu0 %vm545_vm0, %v544_v0  ;;  %v434_v3 = vld [vmem:[#allocation5 + $0x28] sm:$0xff]   ;;  %v441_v4 = vld [vmem:[#allocation7 + $0x38] sm:$0xff]   ;;  %v435_v5 = vld [vmem:[#allocation5 + $0x20] sm:$0xff]   ;;  %s546_s10 = smov [#allocation8]  }
  0x27   :  { %402 = vmatprep.subr.bf16.mxu1 %v544_v0  ;;  %418 = vmatprep.mubr.msk.bf16.mxu1 %vm545_vm0, %v544_v0  ;;  %v436_v6 = vld [vmem:[#allocation5 + $0x18] sm:$0xff]   ;;  %v437_v7 = vld [vmem:[#allocation5 + $0x10] sm:$0xff]   ;;  %v438_v8 = vld [vmem:[#allocation5 + $0x8] sm:$0xff]   ;;  %s332_s11 = sshll.u32 %s546_s10, 4  ;;  %s333_s11 = int_to_ptr.vmem [resolvable:$true] %s332_s11 }
  0x28   :  { %383 = vmatpush3.bf16.msra.mxu0 %v432_v1  ;;  %403 = vmatpush3.bf16.msra.mxu1 %v441_v4  ;;  %v439_v9 = vld [vmem:[#allocation5] sm:$0xff]   ;;  %v440_v10 = vld [vmem:[#allocation2] sm:$0xff]   ;;  %v442_v11 = vld [vmem:[#allocation7 + $0x30] sm:$0xff]   ;;  %s513_s12 = scalar_lea.vmem %s333_s11, 256  ;;  %p518_p2 = scmp.lt.s32.totalorder %s333_s11, %s333_s11 }
  0x29   :  { %384 = vmatprep.subr.bf16.mxu0 %v544_v0  ;;  %404 = vmatprep.subr.bf16.mxu1 %v544_v0  ;;  %v443_v12 = vld [vmem:[#allocation7 + $0x28] sm:$0xff]   ;;  %v444_v13 = vld [vmem:[#allocation7 + $0x20] sm:$0xff]   ;;  %v445_v14 = vld [vmem:[#allocation7 + $0x18] sm:$0xff]   ;;  %p514_p1 = scmp.ne.s32.totalorder %s333_s11, %s513_s12  ;;  %p519_p3 = scmp.lt.s32.totalorder %s513_s12, %s513_s12 }
  0x2a   :  { %v446_v15 = vld [vmem:[#allocation7 + $0x10] sm:$0xff]   ;;  %v447_v16 = vld [vmem:[#allocation7 + $0x8] sm:$0xff]   ;;  %v448_v17 = vld [vmem:[#allocation7] sm:$0xff]  }
  0x2b   :  { %v345_v18 = vld [vmem:[%s599_s2] ss:$0 sm:$0xff]  ;;  %p520_p4 = por %p519_p3, %p518_p2 }
  0x2c   :  { %385 = vmatpush3.bf16.msra.mxu0 %v433_v2  ;;  %405 = vmatpush3.bf16.msra.mxu1 %v442_v11  ;;  %v363_v37 = vld [vmem:[%s601_s4] ss:$0 sm:$0xff] }
  0x2d   :  { %386 = vmatprep.subr.bf16.mxu0 %v544_v0  ;;  %406 = vmatprep.subr.bf16.mxu1 %v544_v0  ;;  %p521_p5 = pnand %p520_p4, %p514_p1 }
  0x30   :  { %387 = vmatpush3.bf16.msra.mxu0 %v434_v3  ;;  %407 = vmatpush3.bf16.msra.mxu1 %v443_v12 }
  0x31   :  { %388 = vmatprep.subr.bf16.mxu0 %v544_v0  ;;  %408 = vmatprep.subr.bf16.mxu1 %v544_v0 }
  0x34   :  { %389 = vmatpush3.bf16.msra.mxu0 %v435_v5  ;;  %409 = vmatpush3.bf16.msra.mxu1 %v444_v13 }
  0x35   :  { %390 = vmatprep.subr.bf16.mxu0 %v544_v0  ;;  %410 = vmatprep.subr.bf16.mxu1 %v544_v0 }
  0x38   :  { %391 = vmatpush3.bf16.msra.mxu0 %v436_v6  ;;  %411 = vmatpush3.bf16.msra.mxu1 %v445_v14 }
  0x39   :  { %392 = vmatprep.subr.bf16.mxu0 %v544_v0  ;;  %412 = vmatprep.subr.bf16.mxu1 %v544_v0 }
  0x3c   :  { %393 = vmatpush3.bf16.msra.mxu0 %v437_v7  ;;  %413 = vmatpush3.bf16.msra.mxu1 %v446_v15 }
  0x3d   :  { %394 = vmatprep.subr.bf16.mxu0 %v544_v0  ;;  %414 = vmatprep.subr.bf16.mxu1 %v544_v0 }
  0x40   :  { %395 = vmatpush3.bf16.msra.mxu0 %v438_v8  ;;  %415 = vmatpush3.bf16.msra.mxu1 %v447_v16 }
  0x41   :  { %396 = vmatprep.subr.bf16.mxu0 %v544_v0  ;;  %416 = vmatprep.subr.bf16.mxu1 %v544_v0 }
  0x44   :  { %397 = vmatpush3.bf16.msra.mxu0 %v439_v9  ;;  %417 = vmatpush3.bf16.msra.mxu1 %v448_v17 }
  0x47   :  { %399 = vmatmul.mubr.bf16.vlgmr.msra.gmra.mxu0 %v440_v10 }
 0x107   :  { %v182_v19 = vpop.f32.mrf.mxu0 }
 0x108   :  { %v183_v20 = vadd.f32 %v345_v18, %v182_v19 }
 0x109   :  { %v400_v21 = vpop.f32.mrf.mxu0 }
 0x10a   :  { %v191_v22 = vmul.f32 0.70710677, %v183_v20  ;;  %v189_v30 = vmul.f32 0.5, %v183_v20 }
 0x10b   :  { %v185_v23 = vpop.f32.mrf.mxu0 }
 0x10c   :  { %449 = verf.f32 %v191_v22  ;;  %v186_v24 = vadd.f32 %v345_v18, %v185_v23 }
 0x10d   :  { %v401_v25 = vpop.f32.mrf.mxu0 }
 0x10e   :  { %v192_v26 = vmul.f32 0.70710677, %v186_v24  ;;  %v190_v31 = vmul.f32 0.5, %v186_v24 }
 0x110   :  { %451 = verf.f32 %v192_v26 }
 0x119   :  { %v450_v27 = vpop.eup %449 }
 0x11a   :  { %v195_v28 = vadd.f32 1.0, %v450_v27 }
 0x11c   :  { %v197_v33 = vmul.f32 %v195_v28, %v189_v30 }
 0x11d   :  { %v452_v29 = vpop.eup %451 }
 0x11e   :  { %v196_v32 = vadd.f32 1.0, %v452_v29 }
 0x120   :  { %v198_v34 = vmul.f32 %v196_v32, %v190_v31 }
 0x122   :  { %v201_v35 = vpack.c.bf16 %v198_v34, %v197_v33 }
 0x124   :  { %419 = vmatmul.mubr.bf16.vlgmr.msra.gmra.mxu1 %v201_v35 }
 0x1e4   :  { %v300_v36 = vpop.f32.mrf.mxu1 }
 0x1e5   :  { %v323_v39 = vadd.f32 %v363_v37, %v300_v36 }
 0x1e6   :  { %v420_v38 = vpop.f32.mrf.mxu1 }
 0x1e7   :  { %325 = vst [vmem:[#allocation8] sm:$0xff] %v323_v39 }
 0x1e8   :  { %v303_v40 = vpop.f32.mrf.mxu1 }
 0x1e9   :  { %v324_v42 = vadd.f32 %v363_v37, %v303_v40 }
 0x1ea   :  { %v421_v41 = vpop.f32.mrf.mxu1 }
 0x1eb   :  { %326 = vst [vmem:[#allocation8 + $0x8] sm:$0xff] %v324_v42 }
 0x1ec   :  { %524 = shalt.err (!%p521_p5)
}
 0x1ed   :  { %s547_s13 = smov 128   ;;  %s548_s14 = smov 8  }
 0x1ee   :  { %338 = dma.vmem_to_hbm [thread:$0]  %s333_s11, 256, %s602_s5, [#allocation4], %s547_s13, %s547_s13, %s548_s14  }
 0x1ef   :  { %537 = dma.done.wait [#allocation4], 256  }
 0x1f0   :  { %538 = vsyncadd [#allocation4], 4294967040 }
 0x1f1   :  { %342 = vsyncpa [#allocation3], 1 }
 0x1f2   :  { %343 = vsyncpa [#allocation6], 1 }
 0x1f3   :  { %344 = vsyncpa [#allocation4], 1 }

</bundles_post_ra>
